<compile_context>
chip_gen: v7x
topology: tpu7x:2x2x1
jax: 0.10.0
libtpu: 0.0.40
codegen_flags: <defaults>
</compile_context>

<pallas_src>
import jax
import jax.numpy as jnp
from jax.experimental import pallas as pl
from jax.experimental.pallas import tpu as pltpu

N_TASKS = 3
IN_DIM = 250
HID = 100
HID_PAD = 128          # lane-aligned hidden width used inside the kernel


def _round_up(x, m):
    return (x + m - 1) // m * m


def regression_kernel(x_ref,
                      w1_ref, b1_ref,
                      w2_ref, b2_ref,
                      w3_ref, b3_ref,
                      w4_ref, b4_ref,
                      wt_ref, bt_ref,
                      out_ref):
    """One batch tile: 4x (Linear + ReLU) trunk + fused task heads (all MXU)."""
    cd = w2_ref.dtype  # matmul-input compute dtype (f32, or bf16 if use_bf16)
    h = jnp.maximum(
        jnp.dot(x_ref[...], w1_ref[...], preferred_element_type=jnp.float32)
        + b1_ref[...], 0.0)
    h = jnp.maximum(
        jnp.dot(h.astype(cd), w2_ref[...], preferred_element_type=jnp.float32)
        + b2_ref[...], 0.0)
    h = jnp.maximum(
        jnp.dot(h.astype(cd), w3_ref[...], preferred_element_type=jnp.float32)
        + b3_ref[...], 0.0)
    h = jnp.maximum(
        jnp.dot(h.astype(cd), w4_ref[...], preferred_element_type=jnp.float32)
        + b4_ref[...], 0.0)
    # All task heads fused into a single (HID_PAD, T*HID) matmul and one
    # lane-dense store of the whole (TB, T*HID) output slab.
    out_ref[...] = (
        jnp.dot(h.astype(cd), wt_ref[...], preferred_element_type=jnp.float32)
        + bt_ref[...])


def prepare_params(params, *, dtype=jnp.float32):
    """Pad hidden width 100->128 (exact zeros) and fuse the task heads.

    One-time preprocessing; padded rows/cols contribute exactly 0 so the
    result is numerically identical to the unpadded computation.  Weights are
    cast to `dtype` (f32 default; bf16 optional); biases stay f32 since they
    are added to the f32 accumulator.
    """
    pad_h = HID_PAD - HID
    t = params["wt"].shape[0]

    w1 = jnp.pad(params["w1"], ((0, 0), (0, pad_h))).astype(dtype)   # (250, 128)
    b1 = jnp.pad(params["b1"], ((0, 0), (0, pad_h)))                 # (1, 128) f32

    def pad_sq(w):
        return jnp.pad(w, ((0, pad_h), (0, pad_h))).astype(dtype)    # (128, 128)

    def pad_b(b):
        return jnp.pad(b, ((0, 0), (0, pad_h)))                      # (1, 128) f32

    w2, b2 = pad_sq(params["w2"]), pad_b(params["b2"])
    w3, b3 = pad_sq(params["w3"]), pad_b(params["b3"])
    w4, b4 = pad_sq(params["w4"]), pad_b(params["b4"])

    # Heads: (T, 100, 100) -> pad K to 128 -> concat columns -> (128, T*100)
    wt = jnp.pad(params["wt"], ((0, 0), (0, pad_h), (0, 0)))         # (T, 128, 100)
    wt_cat = jnp.transpose(wt, (1, 0, 2)).reshape(HID_PAD, t * HID).astype(dtype)
    bt_cat = params["bt"].reshape(1, t * HID)                        # (1, T*100) f32

    return (w1, b1, w2, b2, w3, b3, w4, b4, wt_cat, bt_cat)


def regression_model(x, params, *, block_b=1024, use_bf16=False):
    """x: (B, 250) f32.  params: dict of weights (see init_params).

    Returns (B, n_tasks, 100) f32, matching torch.stack(outs, dim=1).
    """
    b_in = x.shape[0]
    t = params["wt"].shape[0]
    out_w = t * HID

    compute_dtype = jnp.bfloat16 if use_bf16 else jnp.float32
    prepped = prepare_params(params, dtype=compute_dtype)
    if use_bf16:
        x = x.astype(jnp.bfloat16)

    # Batch tile: multiple of 8 sublanes; small enough to give >= 2 grid
    # steps whenever B > 8 (keeps both v7x TensorCores busy via the
    # "parallel" grid axis); capped at block_b so VMEM stays well inside the
    # smallest scoped-VMEM default (v5e: 16 MiB).
    tb = max(8, min(block_b, _round_up(pl.cdiv(b_in, 2), 8)))
    grid = (pl.cdiv(b_in, tb),)   # unpadded shapes; Pallas masks the partial
                                  # last block (computation is purely row-wise)

    full = lambda i: (0, 0)       # weights/biases resident across the grid
    tile = lambda i: (i, 0)       # batch-tiled arrays

    in_specs = [
        pl.BlockSpec((tb, IN_DIM), tile),                   # x
        pl.BlockSpec((IN_DIM, HID_PAD), full),              # w1
        pl.BlockSpec((1, HID_PAD), full),                   # b1
        pl.BlockSpec((HID_PAD, HID_PAD), full),             # w2
        pl.BlockSpec((1, HID_PAD), full),                   # b2
        pl.BlockSpec((HID_PAD, HID_PAD), full),             # w3
        pl.BlockSpec((1, HID_PAD), full),                   # b3
        pl.BlockSpec((HID_PAD, HID_PAD), full),             # w4
        pl.BlockSpec((1, HID_PAD), full),                   # b4
        pl.BlockSpec((HID_PAD, out_w), full),               # wt_cat
        pl.BlockSpec((1, out_w), full),                     # bt_cat
    ]

    out_flat = pl.pallas_call(
        regression_kernel,
        out_shape=jax.ShapeDtypeStruct((b_in, out_w), jnp.float32),
        grid=grid,
        in_specs=in_specs,
        out_specs=pl.BlockSpec((tb, out_w), tile),
        compiler_params=pltpu.CompilerParams(
            dimension_semantics=("parallel",)),
    )(x, *prepped)

    # Free contiguous reshape back to torch.stack(outs, dim=1) layout.
    return out_flat.reshape(b_in, t, HID)


def init_params(key, n_tasks=N_TASKS):
    """Deterministic PyTorch-Linear-style init (uniform(-1/sqrt(fan_in), ...))."""
    def linear(k, fan_in, fan_out):
        kw, kb = jax.random.split(k)
        bound = 1.0 / jnp.sqrt(fan_in)
        w = jax.random.uniform(kw, (fan_in, fan_out), jnp.float32, -bound, bound)
        b = jax.random.uniform(kb, (1, fan_out), jnp.float32, -bound, bound)
        return w, b

    keys = jax.random.split(key, 4 + n_tasks)
    w1, b1 = linear(keys[0], IN_DIM, HID)
    w2, b2 = linear(keys[1], HID, HID)
    w3, b3 = linear(keys[2], HID, HID)
    w4, b4 = linear(keys[3], HID, HID)

    wts, bts = [], []
    for i in range(n_tasks):
        w, b = linear(keys[4 + i], HID, HID)
        wts.append(w)
        bts.append(b)

    return {
        "w1": w1, "b1": b1,
        "w2": w2, "b2": b2,
        "w3": w3, "b3": b3,
        "w4": w4, "b4": b4,
        "wt": jnp.stack(wts, axis=0),   # (T, 100, 100)
        "bt": jnp.stack(bts, axis=0),   # (T, 1, 100)
    }


def regression_model_ref(x, params):
    """Pure-JAX reference mirroring the PyTorch forward."""
    h = jnp.maximum(x @ params["w1"] + params["b1"], 0.0)
    h = jnp.maximum(h @ params["w2"] + params["b2"], 0.0)
    h = jnp.maximum(h @ params["w3"] + params["b3"], 0.0)
    h = jnp.maximum(h @ params["w4"] + params["b4"], 0.0)
    outs = [h @ params["wt"][i] + params["bt"][i]
            for i in range(params["wt"].shape[0])]
    return jnp.stack(outs, axis=1)


if __name__ == "__main__":
    key = jax.random.PRNGKey(0)
    kx, kp, kx2, kx3 = jax.random.split(key, 4)

    params = init_params(kp, N_TASKS)

    # Case 1: small batch, single grid step.
    B = 8
    x = jax.random.normal(kx, (B, IN_DIM), jnp.float32)
    out = jax.block_until_ready(regression_model(x, params))
    ref = regression_model_ref(x, params)
    assert out.shape == (B, N_TASKS, HID), out.shape
    assert jnp.allclose(out, ref, atol=1e-4, rtol=1e-4), "mismatch vs reference (B=8)"

    # Case 2: multi-step grid + PARTIAL final block (B=20 -> tiles 8,8,4),
    # exercising the new unpadded cdiv-grid path (no host pad / slice).
    B2 = 20
    x2 = jax.random.normal(kx2, (B2, IN_DIM), jnp.float32)
    out2 = jax.block_until_ready(regression_model(x2, params, block_b=8))
    ref2 = regression_model_ref(x2, params)
    assert out2.shape == (B2, N_TASKS, HID), out2.shape
    assert jnp.allclose(out2, ref2, atol=1e-4, rtol=1e-4), "mismatch vs reference (B=20)"

    # Case 3: automatic tile choice splits the batch into >= 2 grid steps
    # (v7x megacore) — B=48 -> tb=24, grid=2.
    B3 = 48
    x3 = jax.random.normal(kx3, (B3, IN_DIM), jnp.float32)
    out3 = jax.block_until_ready(regression_model(x3, params))
    ref3 = regression_model_ref(x3, params)
    assert out3.shape == (B3, N_TASKS, HID), out3.shape
    assert jnp.allclose(out3, ref3, atol=1e-4, rtol=1e-4), "mismatch vs reference (B=48)"

    # Case 4 (optional bf16 fast path): looser tolerance vs the f32 reference.
    out4 = jax.block_until_ready(regression_model(x3, params, use_bf16=True))
    assert jnp.allclose(out4, ref3, atol=5e-2, rtol=5e-2), "mismatch vs reference (bf16)"

    print("KERNEL_OK")
</pallas_src>

<mosaic_0001>
module attributes {stable_mosaic.version = 11 : i64} {
  func.func @regression_kernel(%arg0: i32, %arg1: memref<8x250xf32, #tpu.memory_space<vmem>>, %arg2: memref<250x128xf32, #tpu.memory_space<vmem>>, %arg3: memref<1x128xf32, #tpu.memory_space<vmem>>, %arg4: memref<128x128xf32, #tpu.memory_space<vmem>>, %arg5: memref<1x128xf32, #tpu.memory_space<vmem>>, %arg6: memref<128x128xf32, #tpu.memory_space<vmem>>, %arg7: memref<1x128xf32, #tpu.memory_space<vmem>>, %arg8: memref<128x128xf32, #tpu.memory_space<vmem>>, %arg9: memref<1x128xf32, #tpu.memory_space<vmem>>, %arg10: memref<128x300xf32, #tpu.memory_space<vmem>>, %arg11: memref<1x300xf32, #tpu.memory_space<vmem>>, %arg12: memref<8x300xf32, #tpu.memory_space<vmem>>) attributes {dimension_semantics = [#tpu.dimension_semantics<parallel>], iteration_bounds = array<i64: 1>, scalar_prefetch = 0 : i64, scratch_operands = 0 : i64, tpu.core_type = #tpu.core_type<tc>, window_params = [{transform_indices = @transform_0, window_bounds = array<i64: 8, 250>}, {pipeline_mode = #tpu.pipeline_mode<synchronous>, transform_indices = @transform_1, window_bounds = array<i64: 250, 128>}, {pipeline_mode = #tpu.pipeline_mode<synchronous>, transform_indices = @transform_2, window_bounds = array<i64: 1, 128>}, {pipeline_mode = #tpu.pipeline_mode<synchronous>, transform_indices = @transform_3, window_bounds = array<i64: 128, 128>}, {pipeline_mode = #tpu.pipeline_mode<synchronous>, transform_indices = @transform_4, window_bounds = array<i64: 1, 128>}, {pipeline_mode = #tpu.pipeline_mode<synchronous>, transform_indices = @transform_5, window_bounds = array<i64: 128, 128>}, {pipeline_mode = #tpu.pipeline_mode<synchronous>, transform_indices = @transform_6, window_bounds = array<i64: 1, 128>}, {pipeline_mode = #tpu.pipeline_mode<synchronous>, transform_indices = @transform_7, window_bounds = array<i64: 128, 128>}, {pipeline_mode = #tpu.pipeline_mode<synchronous>, transform_indices = @transform_8, window_bounds = array<i64: 1, 128>}, {pipeline_mode = #tpu.pipeline_mode<synchronous>, transform_indices = @transform_9, window_bounds = array<i64: 128, 300>}, {pipeline_mode = #tpu.pipeline_mode<synchronous>, transform_indices = @transform_10, window_bounds = array<i64: 1, 300>}, {transform_indices = @transform_11, window_bounds = array<i64: 8, 300>}]} {
    %c0 = arith.constant 0 : index
    %c0_0 = arith.constant 0 : index
    %0 = vector.load %arg1[%c0, %c0_0] : memref<8x250xf32, #tpu.memory_space<vmem>>, vector<8x250xf32>
    %c0_1 = arith.constant 0 : index
    %c0_2 = arith.constant 0 : index
    %1 = vector.load %arg2[%c0_1, %c0_2] : memref<250x128xf32, #tpu.memory_space<vmem>>, vector<250x128xf32>
    %cst = arith.constant dense<0.000000e+00> : vector<8x128xf32>
    %2 = tpu.matmul %0, %1, %cst {dimension_numbers = #tpu.dot_dimension_numbers<[1], [0], [0], [1], [0, 0, 1, 1], [], []>} : vector<8x250xf32>, vector<250x128xf32>, vector<8x128xf32> -> vector<8x128xf32>
    %c0_3 = arith.constant 0 : index
    %c0_4 = arith.constant 0 : index
    %3 = vector.load %arg3[%c0_3, %c0_4] : memref<1x128xf32, #tpu.memory_space<vmem>>, vector<1x128xf32>
    %4 = vector.broadcast %3 : vector<1x128xf32> to vector<8x128xf32>
    %5 = arith.addf %2, %4 : vector<8x128xf32>
    %cst_5 = arith.constant 0.000000e+00 : f32
    %6 = vector.broadcast %cst_5 : f32 to vector<8x128xf32>
    %7 = arith.maximumf %5, %6 : vector<8x128xf32>
    %c0_6 = arith.constant 0 : index
    %c0_7 = arith.constant 0 : index
    %8 = vector.load %arg4[%c0_6, %c0_7] : memref<128x128xf32, #tpu.memory_space<vmem>>, vector<128x128xf32>
    %cst_8 = arith.constant dense<0.000000e+00> : vector<8x128xf32>
    %9 = tpu.matmul %7, %8, %cst_8 {dimension_numbers = #tpu.dot_dimension_numbers<[1], [0], [0], [1], [0, 0, 1, 1], [], []>} : vector<8x128xf32>, vector<128x128xf32>, vector<8x128xf32> -> vector<8x128xf32>
    %c0_9 = arith.constant 0 : index
    %c0_10 = arith.constant 0 : index
    %10 = vector.load %arg5[%c0_9, %c0_10] : memref<1x128xf32, #tpu.memory_space<vmem>>, vector<1x128xf32>
    %11 = vector.broadcast %10 : vector<1x128xf32> to vector<8x128xf32>
    %12 = arith.addf %9, %11 : vector<8x128xf32>
    %cst_11 = arith.constant 0.000000e+00 : f32
    %13 = vector.broadcast %cst_11 : f32 to vector<8x128xf32>
    %14 = arith.maximumf %12, %13 : vector<8x128xf32>
    %c0_12 = arith.constant 0 : index
    %c0_13 = arith.constant 0 : index
    %15 = vector.load %arg6[%c0_12, %c0_13] : memref<128x128xf32, #tpu.memory_space<vmem>>, vector<128x128xf32>
    %cst_14 = arith.constant dense<0.000000e+00> : vector<8x128xf32>
    %16 = tpu.matmul %14, %15, %cst_14 {dimension_numbers = #tpu.dot_dimension_numbers<[1], [0], [0], [1], [0, 0, 1, 1], [], []>} : vector<8x128xf32>, vector<128x128xf32>, vector<8x128xf32> -> vector<8x128xf32>
    %c0_15 = arith.constant 0 : index
    %c0_16 = arith.constant 0 : index
    %17 = vector.load %arg7[%c0_15, %c0_16] : memref<1x128xf32, #tpu.memory_space<vmem>>, vector<1x128xf32>
    %18 = vector.broadcast %17 : vector<1x128xf32> to vector<8x128xf32>
    %19 = arith.addf %16, %18 : vector<8x128xf32>
    %cst_17 = arith.constant 0.000000e+00 : f32
    %20 = vector.broadcast %cst_17 : f32 to vector<8x128xf32>
    %21 = arith.maximumf %19, %20 : vector<8x128xf32>
    %c0_18 = arith.constant 0 : index
    %c0_19 = arith.constant 0 : index
    %22 = vector.load %arg8[%c0_18, %c0_19] : memref<128x128xf32, #tpu.memory_space<vmem>>, vector<128x128xf32>
    %cst_20 = arith.constant dense<0.000000e+00> : vector<8x128xf32>
    %23 = tpu.matmul %21, %22, %cst_20 {dimension_numbers = #tpu.dot_dimension_numbers<[1], [0], [0], [1], [0, 0, 1, 1], [], []>} : vector<8x128xf32>, vector<128x128xf32>, vector<8x128xf32> -> vector<8x128xf32>
    %c0_21 = arith.constant 0 : index
    %c0_22 = arith.constant 0 : index
    %24 = vector.load %arg9[%c0_21, %c0_22] : memref<1x128xf32, #tpu.memory_space<vmem>>, vector<1x128xf32>
    %25 = vector.broadcast %24 : vector<1x128xf32> to vector<8x128xf32>
    %26 = arith.addf %23, %25 : vector<8x128xf32>
    %cst_23 = arith.constant 0.000000e+00 : f32
    %27 = vector.broadcast %cst_23 : f32 to vector<8x128xf32>
    %28 = arith.maximumf %26, %27 : vector<8x128xf32>
    %c0_24 = arith.constant 0 : index
    %c0_25 = arith.constant 0 : index
    %29 = vector.load %arg10[%c0_24, %c0_25] : memref<128x300xf32, #tpu.memory_space<vmem>>, vector<128x300xf32>
    %cst_26 = arith.constant dense<0.000000e+00> : vector<8x300xf32>
    %30 = tpu.matmul %28, %29, %cst_26 {dimension_numbers = #tpu.dot_dimension_numbers<[1], [0], [0], [1], [0, 0, 1, 1], [], []>} : vector<8x128xf32>, vector<128x300xf32>, vector<8x300xf32> -> vector<8x300xf32>
    %c0_27 = arith.constant 0 : index
    %c0_28 = arith.constant 0 : index
    %31 = vector.load %arg11[%c0_27, %c0_28] : memref<1x300xf32, #tpu.memory_space<vmem>>, vector<1x300xf32>
    %32 = vector.broadcast %31 : vector<1x300xf32> to vector<8x300xf32>
    %33 = arith.addf %30, %32 : vector<8x300xf32>
    %c0_29 = arith.constant 0 : index
    %c0_30 = arith.constant 0 : index
    %34 = vector.load %arg12[%c0_29, %c0_30] : memref<8x300xf32, #tpu.memory_space<vmem>>, vector<8x300xf32>
    tpu.vector_store %arg12[%c0_29, %c0_30], %33 {strides = array<i32>} : memref<8x300xf32, #tpu.memory_space<vmem>>, vector<8x300xf32>,
    return
  }
  func.func @transform_0(%arg0: i32) -> (i32, i32) {
    %c0_i32 = arith.constant 0 : i32
    %c0_i32_0 = arith.constant 0 : i32
    return %arg0, %c0_i32 : i32, i32
  }
  func.func @transform_1(%arg0: i32) -> (i32, i32) {
    %c0_i32 = arith.constant 0 : i32
    %c0_i32_0 = arith.constant 0 : i32
    %c0_i32_1 = arith.constant 0 : i32
    return %c0_i32, %c0_i32_0 : i32, i32
  }
  func.func @transform_2(%arg0: i32) -> (i32, i32) {
    %c0_i32 = arith.constant 0 : i32
    %c0_i32_0 = arith.constant 0 : i32
    %c0_i32_1 = arith.constant 0 : i32
    return %c0_i32, %c0_i32_0 : i32, i32
  }
  func.func @transform_3(%arg0: i32) -> (i32, i32) {
    %c0_i32 = arith.constant 0 : i32
    %c0_i32_0 = arith.constant 0 : i32
    %c0_i32_1 = arith.constant 0 : i32
    return %c0_i32, %c0_i32_0 : i32, i32
  }
  func.func @transform_4(%arg0: i32) -> (i32, i32) {
    %c0_i32 = arith.constant 0 : i32
    %c0_i32_0 = arith.constant 0 : i32
    %c0_i32_1 = arith.constant 0 : i32
    return %c0_i32, %c0_i32_0 : i32, i32
  }
  func.func @transform_5(%arg0: i32) -> (i32, i32) {
    %c0_i32 = arith.constant 0 : i32
    %c0_i32_0 = arith.constant 0 : i32
    %c0_i32_1 = arith.constant 0 : i32
    return %c0_i32, %c0_i32_0 : i32, i32
  }
  func.func @transform_6(%arg0: i32) -> (i32, i32) {
    %c0_i32 = arith.constant 0 : i32
    %c0_i32_0 = arith.constant 0 : i32
    %c0_i32_1 = arith.constant 0 : i32
    return %c0_i32, %c0_i32_0 : i32, i32
  }
  func.func @transform_7(%arg0: i32) -> (i32, i32) {
    %c0_i32 = arith.constant 0 : i32
    %c0_i32_0 = arith.constant 0 : i32
    %c0_i32_1 = arith.constant 0 : i32
    return %c0_i32, %c0_i32_0 : i32, i32
  }
  func.func @transform_8(%arg0: i32) -> (i32, i32) {
    %c0_i32 = arith.constant 0 : i32
    %c0_i32_0 = arith.constant 0 : i32
    %c0_i32_1 = arith.constant 0 : i32
    return %c0_i32, %c0_i32_0 : i32, i32
  }
  func.func @transform_9(%arg0: i32) -> (i32, i32) {
    %c0_i32 = arith.constant 0 : i32
    %c0_i32_0 = arith.constant 0 : i32
    %c0_i32_1 = arith.constant 0 : i32
    return %c0_i32, %c0_i32_0 : i32, i32
  }
  func.func @transform_10(%arg0: i32) -> (i32, i32) {
    %c0_i32 = arith.constant 0 : i32
    %c0_i32_0 = arith.constant 0 : i32
    %c0_i32_1 = arith.constant 0 : i32
    return %c0_i32, %c0_i32_0 : i32, i32
  }
  func.func @transform_11(%arg0: i32) -> (i32, i32) {
    %c0_i32 = arith.constant 0 : i32
    %c0_i32_0 = arith.constant 0 : i32
    return %arg0, %c0_i32 : i32, i32
  }
}

</mosaic_0001>

<bundles_post_ra>
// kernel: tpu_custom_call.1
= control target key start
LH: loop header
LB: loop body
LE: loop exit
PB: predicated region body
PF: predicated region fallthrough
CT: control target
= control target key end

     0   :  { %v1104_v12 = vmov 0.0|0.0   ;;  %vm80_vm0 = vcmask 998400   ;;  %s1627_s0 = inlined_call_operand.vmem [shape: f32[8,250], index: 0, kind: input, shape index: {}]   ;;  %s1628_s1 = inlined_call_operand.vmem [shape: f32[250,128], index: 1, kind: input, shape index: {}]   ;;  %s1629_s2 = inlined_call_operand.vmem [shape: f32[1,128], index: 2, kind: input, shape index: {}]   ;;  %s1630_s3 = inlined_call_operand.vmem [shape: f32[128,128], index: 3, kind: input, shape index: {}]   ;;  %s1631_s4 = inlined_call_operand.vmem [shape: f32[1,128], index: 4, kind: input, shape index: {}]   ;;  %s1632_s5 = inlined_call_operand.vmem [shape: f32[128,128], index: 5, kind: input, shape index: {}]   ;;  %s1633_s6 = inlined_call_operand.vmem [shape: f32[1,128], index: 6, kind: input, shape index: {}]   ;;  %s1634_s7 = inlined_call_operand.vmem [shape: f32[128,128], index: 7, kind: input, shape index: {}]   ;;  %s1635_s8 = inlined_call_operand.vmem [shape: f32[1,128], index: 8, kind: input, shape index: {}]   ;;  %s1636_s9 = inlined_call_operand.vmem [shape: f32[128,300], index: 9, kind: input, shape index: {}]   ;;  %s1637_s10 = inlined_call_operand.vmem [shape: f32[1,300], index: 10, kind: input, shape index: {}]   ;;  %s1638_s11 = inlined_call_operand.hbm [shape: f32[8,300], index: 11, kind: output, shape index: {}]  }
   0x1   :  { %v57_v0 = vld [vmem:[%s1628_s1 + $0x80] sm:$0xff]  ;;  %v58_v1 = vld [vmem:[%s1628_s1 + $0x88] sm:$0xff]  ;;  %v59_v5 = vld [vmem:[%s1628_s1 + $0x90] sm:$0xff]  ;;  %947 = vmatprep.subr.bf16.mxu1 %v1104_v12 }
   0x2   :  { %v41_v2 = vld [vmem:[%s1628_s1] sm:$0xff]  ;;  %v914_v3 = vpack.c.bf16 %v58_v1, %v57_v0  ;;  %v42_v4 = vld [vmem:[%s1628_s1 + $0x8] sm:$0xff]  ;;  %v60_v6 = vld [vmem:[%s1628_s1 + $0x98] sm:$0xff] }
   0x3   :  { %v916_v7 = vpack.c.bf16 %v42_v4, %v41_v2  ;;  %v918_v8 = vpack.c.bf16 %v60_v6, %v59_v5  ;;  %v43_v9 = vld [vmem:[%s1628_s1 + $0x10] sm:$0xff]  ;;  %v44_v10 = vld [vmem:[%s1628_s1 + $0x18] sm:$0xff]  ;;  %v61_v11 = vld [vmem:[%s1628_s1 + $0xa0] sm:$0xff] }
   0x4   :  { %915 = vmatprep.subr.bf16.mxu0 %v914_v3  ;;  %v62_v13 = vld [vmem:[%s1628_s1 + $0xa8] sm:$0xff]  ;;  %v920_v14 = vpack.c.bf16 %v44_v10, %v43_v9  ;;  %v45_v16 = vld [vmem:[%s1628_s1 + $0x20] sm:$0xff]  ;;  %v63_v18 = vld [vmem:[%s1628_s1 + $0xb0] sm:$0xff] }
   0x5   :  { %917 = vmatpush3.bf16.msra.mxu0 %v916_v7  ;;  %v922_v15 = vpack.c.bf16 %v62_v13, %v61_v11  ;;  %v46_v17 = vld [vmem:[%s1628_s1 + $0x28] sm:$0xff]  ;;  %v64_v19 = vld [vmem:[%s1628_s1 + $0xb8] sm:$0xff]  ;;  %v47_v22 = vld [vmem:[%s1628_s1 + $0x30] sm:$0xff] }
   0x6   :  { %919 = vmatprep.subr.bf16.mxu0 %v918_v8  ;;  %v924_v20 = vpack.c.bf16 %v46_v17, %v45_v16  ;;  %v926_v21 = vpack.c.bf16 %v64_v19, %v63_v18  ;;  %v48_v23 = vld [vmem:[%s1628_s1 + $0x38] sm:$0xff]  ;;  %v65_v24 = vld [vmem:[%s1628_s1 + $0xc0] sm:$0xff]  ;;  %v66_v25 = vld [vmem:[%s1628_s1 + $0xc8] sm:$0xff] }
   0x7   :  { %v40_v26 = vld [vmem:[%s1627_s0 + $0x8] sm:$0xff]  ;;  %v159_v27 = vld [vmem:[%s1630_s3] sm:$0xff]  ;;  %v928_v28 = vpack.c.bf16 %v48_v23, %v47_v22  ;;  %v161_v30 = vld [vmem:[%s1630_s3 + $0x10] sm:$0xff]  ;;  %v930_v32 = vpack.c.bf16 %v66_v25, %v65_v24 }
   0x8   :  { %667 = vmatprep.mubr.msk.f32.mxu0 %vm80_vm0, %v40_v26  ;;  %v160_v29 = vld [vmem:[%s1630_s3 + $0x8] sm:$0xff]  ;;  %v162_v31 = vld [vmem:[%s1630_s3 + $0x18] sm:$0xff]  ;;  %v49_v33 = vld [vmem:[%s1628_s1 + $0x40] sm:$0xff] }
   0x9   :  { %921 = vmatpush3.bf16.msra.mxu0 %v920_v14  ;;  %v50_v34 = vld [vmem:[%s1628_s1 + $0x48] sm:$0xff]  ;;  %v948_v35 = vpack.c.bf16 %v160_v29, %v159_v27  ;;  %v67_v36 = vld [vmem:[%s1628_s1 + $0xd0] sm:$0xff]  ;;  %v68_v37 = vld [vmem:[%s1628_s1 + $0xd8] sm:$0xff]  ;;  %v951_v38 = vpack.c.bf16 %v162_v31, %v161_v30 }
   0xa   :  { %923 = vmatprep.subr.bf16.mxu0 %v922_v15 }
   0xb   :  { %949 = vmatpush3.bf16.msra.mxu1 %v948_v35 }
   0xd   :  { %925 = vmatpush3.bf16.msra.mxu0 %v924_v20 }
   0xe   :  { %927 = vmatprep.subr.bf16.mxu0 %v926_v21 }
   0xf   :  { %16 = vsyncpa [#allocation3], 0  ;;  %v932_v39 = vpack.c.bf16 %v50_v34, %v49_v33  ;;  %950 = vmatprep.subr.bf16.mxu1 %v1104_v12  ;;  %v163_v40 = vld [vmem:[%s1630_s3 + $0x20] sm:$0xff]  ;;  %v164_v41 = vld [vmem:[%s1630_s3 + $0x28] sm:$0xff]  ;;  %v934_v42 = vpack.c.bf16 %v68_v37, %v67_v36  ;;  %vm84_vm1 = vcmask 1041408   ;;  %vm1105_vm2 = vmmov 1  }
  0x10   :  { %v51_v43 = vld [vmem:[%s1628_s1 + $0x50] sm:$0xff]  ;;  %v52_v44 = vld [vmem:[%s1628_s1 + $0x58] sm:$0xff]  ;;  %v69_v45 = vld [vmem:[%s1628_s1 + $0xe0] sm:$0xff]  ;;  %952 = vmatpush3.bf16.msra.mxu1 %v951_v38  ;;  %v954_v47 = vpack.c.bf16 %v164_v41, %v163_v40  ;;  %vm1106_vm4 = vmmov 0   ;;  %v1107_v11 = vmov 0.0   ;;  %s1108_s15 = smov [#allocation2]  }
  0x11   :  { %929 = vmatpush3.bf16.msra.mxu0 %v928_v28  ;;  %v70_v46 = vld [vmem:[%s1628_s1 + $0xe8] sm:$0xff]  ;;  %v936_v48 = vpack.c.bf16 %v52_v44, %v51_v43  ;;  %953 = vmatprep.subr.bf16.mxu1 %v1104_v12  ;;  %v165_v49 = vld [vmem:[%s1630_s3 + $0x30] sm:$0xff]  ;;  %v166_v50 = vld [vmem:[%s1630_s3 + $0x38] sm:$0xff]  ;;  %vm649_vm5 = vcmask 359424  }
  0x12   :  { %931 = vmatprep.subr.bf16.mxu0 %v930_v32  ;;  %v938_v51 = vpack.c.bf16 %v70_v46, %v69_v45  ;;  %v53_v52 = vld [vmem:[%s1628_s1 + $0x60] sm:$0xff]  ;;  %v54_v53 = vld [vmem:[%s1628_s1 + $0x68] sm:$0xff]  ;;  %v71_v54 = vld [vmem:[%s1628_s1 + $0xf0] sm:$0xff]  ;;  %v957_v56 = vpack.c.bf16 %v166_v50, %v165_v49  ;;  %806 = vmatprep.mubr.msk.f32.mxu1 %vm1106_vm4, %v1107_v11 }
  0x13   :  { %v72_v55 = vld [vmem:[%s1628_s1 + $0xf8] sm:$0x3]  ;;  %v940_v57 = vpack.c.bf16 %v54_v53, %v53_v52  ;;  %v167_v58 = vld [vmem:[%s1630_s3 + $0x40] sm:$0xff]  ;;  %v168_v59 = vld [vmem:[%s1630_s3 + $0x48] sm:$0xff] }
  0x14   :  { %955 = vmatpush3.bf16.msra.mxu1 %v954_v47  ;;  %v942_v60 = vpack.c.bf16 %v72_v55, %v71_v54  ;;  %v55_v61 = vld [vmem:[%s1628_s1 + $0x70] sm:$0xff]  ;;  %v56_v62 = vld [vmem:[%s1628_s1 + $0x78] sm:$0xff]  ;;  %vm943_vm3 = vmpackc.low %vm84_vm1, %vm1105_vm2  ;;  %v960_v63 = vpack.c.bf16 %v168_v59, %v167_v58 }
  0x15   :  { %933 = vmatpush3.bf16.msra.mxu0 %v932_v39  ;;  %956 = vmatprep.subr.bf16.mxu1 %v1104_v12  ;;  %v945_v0 = vpack.c.bf16 %v56_v62, %v55_v61  ;;  %v169_v1 = vld [vmem:[%s1630_s3 + $0x50] sm:$0xff]  ;;  %v170_v2 = vld [vmem:[%s1630_s3 + $0x58] sm:$0xff]  ;;  %v39_v4 = vld [vmem:[%s1627_s0] sm:$0xff] }
  0x16   :  { %935 = vmatprep.subr.bf16.mxu0 %v934_v42  ;;  %v963_v3 = vpack.c.bf16 %v170_v2, %v169_v1  ;;  %v171_v5 = vld [vmem:[%s1630_s3 + $0x60] sm:$0xff]  ;;  %v172_v6 = vld [vmem:[%s1630_s3 + $0x68] sm:$0xff]  ;;  %v173_v8 = vld [vmem:[%s1630_s3 + $0x70] sm:$0xff] }
  0x17   :  { %v966_v7 = vpack.c.bf16 %v172_v6, %v171_v5  ;;  %v174_v9 = vld [vmem:[%s1630_s3 + $0x78] sm:$0xff]  ;;  %v253_v13 = vld [vmem:[%s1632_s5] sm:$0xff]  ;;  %v254_v14 = vld [vmem:[%s1632_s5 + $0x8] sm:$0xff] }
  0x18   :  { %958 = vmatpush3.bf16.msra.mxu1 %v957_v56  ;;  %v969_v10 = vpack.c.bf16 %v174_v9, %v173_v8  ;;  %v255_v15 = vld [vmem:[%s1632_s5 + $0x10] sm:$0xff]  ;;  %v972_v16 = vpack.c.bf16 %v254_v14, %v253_v13  ;;  %v256_v17 = vld [vmem:[%s1632_s5 + $0x18] sm:$0xff]  ;;  %v257_v19 = vld [vmem:[%s1632_s5 + $0x20] sm:$0xff] }
  0x19   :  { %937 = vmatpush3.bf16.msra.mxu0 %v936_v48  ;;  %959 = vmatprep.subr.bf16.mxu1 %v1104_v12  ;;  %v975_v18 = vpack.c.bf16 %v256_v17, %v255_v15  ;;  %v258_v20 = vld [vmem:[%s1632_s5 + $0x28] sm:$0xff]  ;;  %v259_v22 = vld [vmem:[%s1632_s5 + $0x30] sm:$0xff]  ;;  %v260_v23 = vld [vmem:[%s1632_s5 + $0x38] sm:$0xff] }
  0x1a   :  { %939 = vmatprep.subr.bf16.mxu0 %v938_v51  ;;  %v978_v21 = vpack.c.bf16 %v258_v20, %v257_v19  ;;  %v981_v24 = vpack.c.bf16 %v260_v23, %v259_v22  ;;  %v261_v25 = vld [vmem:[%s1632_s5 + $0x40] sm:$0xff]  ;;  %v262_v26 = vld [vmem:[%s1632_s5 + $0x48] sm:$0xff]  ;;  %v263_v28 = vld [vmem:[%s1632_s5 + $0x50] sm:$0xff] }
  0x1b   :  { %v984_v27 = vpack.c.bf16 %v262_v26, %v261_v25  ;;  %v264_v29 = vld [vmem:[%s1632_s5 + $0x58] sm:$0xff]  ;;  %v265_v31 = vld [vmem:[%s1632_s5 + $0x60] sm:$0xff]  ;;  %v266_v32 = vld [vmem:[%s1632_s5 + $0x68] sm:$0xff] }
  0x1c   :  { %961 = vmatpush3.bf16.msra.mxu1 %v960_v63  ;;  %v987_v30 = vpack.c.bf16 %v264_v29, %v263_v28  ;;  %v990_v33 = vpack.c.bf16 %v266_v32, %v265_v31  ;;  %v665_v35 = vld [vmem:[%s1629_s2] ss:$0 sm:$0xff]  ;;  %v267_v40 = vld [vmem:[%s1632_s5 + $0x70] sm:$0xff]  ;;  %v268_v41 = vld [vmem:[%s1632_s5 + $0x78] sm:$0xff] }
  0x1d   :  { %941 = vmatpush3.bf16.msra.mxu0 %v940_v57  ;;  %962 = vmatprep.subr.bf16.mxu1 %v1104_v12  ;;  %v993_v42 = vpack.c.bf16 %v268_v41, %v267_v40  ;;  %v347_v43 = vld [vmem:[%s1634_s7] sm:$0xff]  ;;  %v348_v44 = vld [vmem:[%s1634_s7 + $0x8] sm:$0xff]  ;;  %v349_v45 = vld [vmem:[%s1634_s7 + $0x10] sm:$0xff] }
  0x1e   :  { %944 = vmatprep.subr.msk.bf16.mxu0 %vm943_vm3, %v942_v60  ;;  %v996_v46 = vpack.c.bf16 %v348_v44, %v347_v43  ;;  %v350_v47 = vld [vmem:[%s1634_s7 + $0x18] sm:$0xff]  ;;  %v351_v49 = vld [vmem:[%s1634_s7 + $0x20] sm:$0xff]  ;;  %v352_v50 = vld [vmem:[%s1634_s7 + $0x28] sm:$0xff] }
  0x1f   :  { %v999_v48 = vpack.c.bf16 %v350_v47, %v349_v45  ;;  %v1002_v51 = vpack.c.bf16 %v352_v50, %v351_v49  ;;  %v353_v52 = vld [vmem:[%s1634_s7 + $0x30] sm:$0xff]  ;;  %v354_v53 = vld [vmem:[%s1634_s7 + $0x38] sm:$0xff]  ;;  %v355_v55 = vld [vmem:[%s1634_s7 + $0x40] sm:$0xff] }
  0x20   :  { %964 = vmatpush3.bf16.msra.mxu1 %v963_v3  ;;  %v1005_v54 = vpack.c.bf16 %v354_v53, %v353_v52  ;;  %v356_v56 = vld [vmem:[%s1634_s7 + $0x48] sm:$0xff]  ;;  %v357_v58 = vld [vmem:[%s1634_s7 + $0x50] sm:$0xff]  ;;  %v358_v59 = vld [vmem:[%s1634_s7 + $0x58] sm:$0xff] }
  0x21   :  { %946 = vmatpush3.bf16.msra.mxu0 %v945_v0  ;;  %965 = vmatprep.subr.bf16.mxu1 %v1104_v12  ;;  %v1008_v57 = vpack.c.bf16 %v356_v56, %v355_v55  ;;  %v1011_v60 = vpack.c.bf16 %v358_v59, %v357_v58  ;;  %v359_v61 = vld [vmem:[%s1634_s7 + $0x60] sm:$0xff]  ;;  %v360_v62 = vld [vmem:[%s1634_s7 + $0x68] sm:$0xff]  ;;  %v361_v5 = vld [vmem:[%s1634_s7 + $0x70] sm:$0xff] }
  0x22   :  { %971 = vmatprep.subr.bf16.mxu0 %v1104_v12  ;;  %v1014_v63 = vpack.c.bf16 %v360_v62, %v359_v61  ;;  %v668_v0 = vld [vmem:[%s1631_s4] ss:$0 sm:$0xff]  ;;  %v362_v6 = vld [vmem:[%s1634_s7 + $0x78] sm:$0xff]  ;;  %v442_v8 = vld [vmem:[%s1636_s9 + $0x8] sm:$0xff] }
  0x23   :  { %v445_v9 = vld [vmem:[%s1636_s9 + $0x20] sm:$0xff]  ;;  %v444_v14 = vld [vmem:[%s1636_s9 + $0x18] sm:$0xff]  ;;  %v451_v17 = vld [vmem:[%s1636_s9 + $0x50] sm:$0xff] }
  0x24   :  { %153 = vmatmul.mubr.f32.vlgmr.msra.gmra.mrb[0].mxu0 %v39_v4  ;;  %967 = vmatpush3.bf16.msra.mxu1 %v966_v7  ;;  %v1017_v7 = vpack.c.bf16 %v362_v6, %v361_v5  ;;  %v1019_v13 = vpack.c.bf16 %v445_v9, %v442_v8  ;;  %v450_v20 = vld [vmem:[%s1636_s9 + $0x48] sm:$0xff]  ;;  %v457_v23 = vld [vmem:[%s1636_s9 + $0x80] sm:$0xff]  ;;  %v456_v26 = vld [vmem:[%s1636_s9 + $0x78] sm:$0xff] }
  0x25   :  { %968 = vmatprep.subr.bf16.mxu1 %v1104_v12  ;;  %841 = vmatprep.mubr.msk.f32.mxu0 %vm1106_vm4, %v1107_v11  ;;  %v454_v22 = vld [vmem:[%s1636_s9 + $0x68] sm:$0xff]  ;;  %v453_v25 = vld [vmem:[%s1636_s9 + $0x60] sm:$0xff]  ;;  %v460_v28 = vld [vmem:[%s1636_s9 + $0x98] sm:$0xff] }
  0x26   :  { %973 = vmatpush3.bf16.msra.mxu0 %v972_v16  ;;  %v448_v16 = vld [vmem:[%s1636_s9 + $0x38] sm:$0xff]  ;;  %v463_v29 = vld [vmem:[%s1636_s9 + $0xb0] sm:$0xff]  ;;  %v462_v32 = vld [vmem:[%s1636_s9 + $0xa8] sm:$0xff] }
  0x27   :  { %974 = vmatprep.subr.bf16.mxu0 %v1104_v12  ;;  %v1023_v19 = vpack.c.bf16 %v451_v17, %v448_v16  ;;  %v459_v31 = vld [vmem:[%s1636_s9 + $0x90] sm:$0xff]  ;;  %v472_v40 = vld [vmem:[%s1636_s9 + $0xf8] sm:$0xff]  ;;  %v474_v44 = vld [vmem:[%s1636_s9 + $0x108] sm:$0xff] }
  0x28   :  { %970 = vmatpush3.bf16.msra.mxu1 %v969_v10  ;;  %v441_v10 = vld [vmem:[%s1636_s9] sm:$0xff]  ;;  %v475_v41 = vld [vmem:[%s1636_s9 + $0x110] sm:$0xff]  ;;  %v480_v50 = vld [vmem:[%s1636_s9 + $0x138] sm:$0xff] }
  0x29   :  { %995 = vmatprep.subr.bf16.mxu1 %v1104_v12  ;;  %v1021_v15 = vpack.c.bf16 %v444_v14, %v441_v10  ;;  %v471_v43 = vld [vmem:[%s1636_s9 + $0xf0] sm:$0xff]  ;;  %v481_v47 = vld [vmem:[%s1636_s9 + $0x140] sm:$0xff]  ;;  %v452_v61 = vld [vmem:[%s1636_s9 + $0x58] sm:$0xff] }
  0x2a   :  { %976 = vmatpush3.bf16.msra.mxu0 %v975_v18  ;;  %v447_v18 = vld [vmem:[%s1636_s9 + $0x30] sm:$0xff]  ;;  %v1041_v45 = vpack.c.bf16 %v474_v44, %v471_v43  ;;  %v477_v49 = vld [vmem:[%s1636_s9 + $0x120] sm:$0xff]  ;;  %v470_v5 = vld [vmem:[%s1636_s9 + $0xe8] sm:$0xff] }
  0x2b   :  { %977 = vmatprep.subr.bf16.mxu0 %v1104_v12  ;;  %v669_v52 = vld [vmem:[%s1633_s6] ss:$0 sm:$0xff]  ;;  %v443_v53 = vld [vmem:[%s1636_s9 + $0x10] sm:$0xff]  ;;  %v476_v8 = vld [vmem:[%s1636_s9 + $0x118] sm:$0xff] }
  0x2c   :  { %v479_v10 = vld [vmem:[%s1636_s9 + $0x130] sm:$0xff] }
  0x2d   :  { %v487_v16 = vld [vmem:[%s1636_s9 + $0x170] sm:$0xff] }
  0x2e   :  { %979 = vmatpush3.bf16.msra.mxu0 %v978_v21  ;;  %v1025_v21 = vpack.c.bf16 %v450_v20, %v447_v18  ;;  %v483_v18 = vld [vmem:[%s1636_s9 + $0x150] sm:$0xff] }
  0x2f   :  { %980 = vmatprep.subr.bf16.mxu0 %v1104_v12 }
  0x32   :  { %982 = vmatpush3.bf16.msra.mxu0 %v981_v24  ;;  %v1027_v24 = vpack.c.bf16 %v457_v23, %v454_v22  ;;  %v670_v23 = vld [vmem:[%s1635_s8] ss:$0 sm:$0xff]  ;;  %s657_s8 = sshll.u32 %s1108_s15, 4  ;;  %s658_s8 = int_to_ptr.vmem [resolvable:$true] %s657_s8 }
  0x33   :  { %983 = vmatprep.subr.bf16.mxu0 %v1104_v12  ;;  %s1080_s16 = scalar_lea.vmem %s658_s8, 384  ;;  %p1085_p1 = scmp.lt.s32.totalorder %s658_s8, %s658_s8 }
  0x34   :  { %p1081_p0 = scmp.ne.s32.totalorder %s658_s8, %s1080_s16  ;;  %p1086_p2 = scmp.lt.s32.totalorder %s1080_s16, %s1080_s16 }
  0x36   :  { %985 = vmatpush3.bf16.msra.mxu0 %v984_v27  ;;  %v1029_v27 = vpack.c.bf16 %v456_v26, %v453_v25  ;;  %p1087_p3 = por %p1086_p2, %p1085_p1 }
  0x37   :  { %986 = vmatprep.subr.bf16.mxu0 %v1104_v12 }
  0x38   :  { %p1088_p4 = pnand %p1087_p3, %p1081_p0 }
  0x3a   :  { %988 = vmatpush3.bf16.msra.mxu0 %v987_v30  ;;  %v1031_v30 = vpack.c.bf16 %v463_v29, %v460_v28  ;;  %v491_v28 = vlaneseq }
  0x3b   :  { %989 = vmatprep.subr.bf16.mxu0 %v1104_v12 }
  0x3c   :  { %v492_v29 = vshrl.u32 %v491_v28, 7 }
  0x3e   :  { %991 = vmatpush3.bf16.msra.mxu0 %v990_v33  ;;  %v1033_v33 = vpack.c.bf16 %v462_v32, %v459_v31  ;;  %v501_v31 = vsub.s32 2, %v492_v29  ;;  %v489_v32 = vld [vmem:[%s1637_s10] sm:$0x7] }
  0x3f   :  { %992 = vmatprep.subr.bf16.mxu0 %v1104_v12 }
  0x42   :  { %994 = vmatpush3.bf16.msra.mxu0 %v993_v42  ;;  %v1039_v42 = vpack.c.bf16 %v475_v41, %v472_v40 }
  0x43   :  { %1020 = vmatprep.subr.bf16.mxu0 %v1019_v13  ;;  %v482_v13 = vld [vmem:[%s1636_s9 + $0x148] sm:$0xff] }
  0x44   :  { %v1070_v14 = vpack.c.bf16 %v482_v13, %v479_v10 }
  0xf7   :  { %v703_v34 = vpop.f32.mrb[0].mxu0 }
  0xf8   :  { %v704_v36 = vpop.f32.mrb[1].mxu0 }
  0xf9   :  { %v705_v37 = vadd.f32 %v704_v36, %v703_v34  ;;  %v466_v34 = vld [vmem:[%s1636_s9 + $0xc8] sm:$0xff] }
  0xfb   :  { %v155_v38 = vadd.f32 %v705_v37, %v665_v35  ;;  %v469_v35 = vld [vmem:[%s1636_s9 + $0xe0] sm:$0xff] }
  0xfc   :  { %v1035_v36 = vpack.c.bf16 %v469_v35, %v466_v34  ;;  %v465_v37 = vld [vmem:[%s1636_s9 + $0xc0] sm:$0xff]  ;;  %v502_v35 = vrot.slane %v489_v32, %v501_v31 }
  0xfd   :  { %v158_v39 = vmax.f32 %v155_v38, 0.0  ;;  %v468_v38 = vld [vmem:[%s1636_s9 + $0xd8] sm:$0xff] }
  0xff   :  { %807 = vmatmul.mubr.f32.vlgmr.msra.gmra.mrb[0].mxu1 %v158_v39  ;;  %v1037_v39 = vpack.c.bf16 %v468_v38, %v465_v37 }
 0x100   :  { %876 = vmatprep.mubr.msk.f32.mxu1 %vm1106_vm4, %v1107_v11  ;;  %997 = vmatpush3.bf16.msra.mxu1 %v996_v46  ;;  %v478_v46 = vld [vmem:[%s1636_s9 + $0x128] sm:$0xff] }
 0x101   :  { %998 = vmatprep.subr.bf16.mxu1 %v1104_v12 }
 0x104   :  { %1000 = vmatpush3.bf16.msra.mxu1 %v999_v48  ;;  %v1043_v48 = vpack.c.bf16 %v481_v47, %v478_v46 }
 0x105   :  { %1001 = vmatprep.subr.bf16.mxu1 %v1104_v12 }
 0x108   :  { %1003 = vmatpush3.bf16.msra.mxu1 %v1002_v51  ;;  %v1045_v51 = vpack.c.bf16 %v480_v50, %v477_v49 }
 0x109   :  { %1004 = vmatprep.subr.bf16.mxu1 %v1104_v12 }
 0x10c   :  { %1006 = vmatpush3.bf16.msra.mxu1 %v1005_v54  ;;  %v446_v54 = vld [vmem:[%s1636_s9 + $0x28] sm:$0xff] }
 0x10d   :  { %1007 = vmatprep.subr.bf16.mxu1 %v1104_v12  ;;  %v1052_v58 = vpack.c.bf16 %v446_v54, %v443_v53 }
 0x110   :  { %1009 = vmatpush3.bf16.msra.mxu1 %v1008_v57 }
 0x111   :  { %1010 = vmatprep.subr.bf16.mxu1 %v1104_v12 }
 0x114   :  { %1012 = vmatpush3.bf16.msra.mxu1 %v1011_v60  ;;  %v449_v60 = vld [vmem:[%s1636_s9 + $0x40] sm:$0xff] }
 0x115   :  { %1013 = vmatprep.subr.bf16.mxu1 %v1104_v12  ;;  %v1055_v62 = vpack.c.bf16 %v452_v61, %v449_v60 }
 0x118   :  { %1015 = vmatpush3.bf16.msra.mxu1 %v1014_v63  ;;  %v455_v63 = vld [vmem:[%s1636_s9 + $0x70] sm:$0xff] }
 0x119   :  { %1016 = vmatprep.subr.bf16.mxu1 %v1104_v12 }
 0x11c   :  { %1018 = vmatpush3.bf16.msra.mxu1 %v1017_v7  ;;  %v473_v7 = vld [vmem:[%s1636_s9 + $0x100] sm:$0xff] }
 0x11d   :  { %1051 = vmatprep.subr.bf16.mxu1 %v1104_v12  ;;  %v1067_v9 = vpack.c.bf16 %v476_v8, %v473_v7 }
 0x1d2   :  { %v248_v1 = vpop.f32.mrb[0].mxu1 }
 0x1d3   :  { %v249_v2 = vadd.f32 %v668_v0, %v248_v1  ;;  %v808_v3 = vpop.f32.mrb[1].mxu1  ;;  %v458_v0 = vld [vmem:[%s1636_s9 + $0x88] sm:$0xff] }
 0x1d4   :  { %v1058_v1 = vpack.c.bf16 %v458_v0, %v455_v63 }
 0x1d5   :  { %v252_v4 = vmax.f32 %v249_v2, 0.0  ;;  %v461_v2 = vld [vmem:[%s1636_s9 + $0xa0] sm:$0xff] }
 0x1d7   :  { %842 = vmatmul.mubr.f32.vlgmr.msra.gmra.mrb[2].mxu0 %v252_v4  ;;  %v467_v4 = vld [vmem:[%s1636_s9 + $0xd0] sm:$0xff] }
 0x1d8   :  { %570 = vmatprep.mubr.f32.mxu0 %v1107_v11  ;;  %1022 = vmatpush1.bf16.msra.mxu0 %v1021_v15  ;;  %v1064_v6 = vpack.c.bf16 %v470_v5, %v467_v4  ;;  %v484_v15 = vld [vmem:[%s1636_s9 + $0x158] sm:$0xff] }
 0x1d9   :  { %1024 = vmatprep.subr.bf16.mxu0 %v1023_v19  ;;  %v1047_v17 = vpack.c.bf16 %v487_v16, %v484_v15  ;;  %v486_v19 = vld [vmem:[%s1636_s9 + $0x168] sm:$0xff] }
 0x1da   :  { %v1049_v20 = vpack.c.bf16 %v486_v19, %v483_v18 }
 0x1dc   :  { %1026 = vmatpush1.bf16.msra.mxu0 %v1025_v21  ;;  %v488_v21 = vld [vmem:[%s1636_s9 + $0x178] sm:$0xff] }
 0x1dd   :  { %1028 = vmatprep.subr.bf16.mxu0 %v1027_v24 }
 0x1e0   :  { %1030 = vmatpush1.bf16.msra.mxu0 %v1029_v27 }
 0x1e1   :  { %1032 = vmatprep.subr.bf16.mxu0 %v1031_v30  ;;  %v493_v30 = vsub.s32 0, %v492_v29 }
 0x1e3   :  { %v494_v34 = vrot.slane %v489_v32, %v493_v30 }
 0x1e4   :  { %1034 = vmatpush1.bf16.msra.mxu0 %v1033_v33  ;;  %v497_v33 = vsub.s32 1, %v492_v29 }
 0x1e5   :  { %1036 = vmatprep.subr.bf16.mxu0 %v1035_v36 }
 0x1e6   :  { %v498_v36 = vrot.slane %v489_v32, %v497_v33 }
 0x1e8   :  { %1038 = vmatpush1.bf16.msra.mxu0 %v1037_v39 }
 0x1e9   :  { %1040 = vmatprep.subr.bf16.mxu0 %v1039_v42 }
 0x1ec   :  { %1042 = vmatpush1.bf16.msra.mxu0 %v1041_v45 }
 0x1ed   :  { %1044 = vmatprep.subr.bf16.mxu0 %v1043_v48 }
 0x1f0   :  { %1046 = vmatpush1.bf16.msra.mxu0 %v1045_v51 }
 0x1f1   :  { %1048 = vmatprep.subr.bf16.mxu0 %v1047_v17 }
 0x1f4   :  { %1050 = vmatpush1.bf16.msra.mxu0 %v1049_v20 }
 0x2aa   :  { %v342_v55 = vpop.f32.mrb[2].mxu0 }
 0x2ab   :  { %v343_v56 = vadd.f32 %v669_v52, %v342_v55  ;;  %v843_v57 = vpop.f32.mrb[3].mxu0 }
 0x2ad   :  { %v346_v59 = vmax.f32 %v343_v56, 0.0 }
 0x2af   :  { %877 = vmatmul.mubr.f32.vlgmr.msra.gmra.mrb[2].mxu1 %v346_v59 }
 0x2b0   :  { %1053 = vmatpush3.bf16.msra.mxu1 %v1052_v58  ;;  %911 = vmatprep.mubr.msk.f32.mxu1 %vm1106_vm4, %v1107_v11  ;;  %v464_v11 = vld [vmem:[%s1636_s9 + $0xb8] sm:$0xff] }
 0x2b1   :  { %1054 = vmatprep.subr.bf16.mxu1 %v1104_v12  ;;  %v1061_v3 = vpack.c.bf16 %v464_v11, %v461_v2 }
 0x2b4   :  { %1056 = vmatpush3.bf16.msra.mxu1 %v1055_v62 }
 0x2b5   :  { %1057 = vmatprep.subr.bf16.mxu1 %v1104_v12 }
 0x2b8   :  { %1059 = vmatpush3.bf16.msra.mxu1 %v1058_v1 }
 0x2b9   :  { %1060 = vmatprep.subr.bf16.mxu1 %v1104_v12 }
 0x2bc   :  { %1062 = vmatpush3.bf16.msra.mxu1 %v1061_v3 }
 0x2bd   :  { %1063 = vmatprep.subr.bf16.mxu1 %v1104_v12 }
 0x2c0   :  { %1065 = vmatpush3.bf16.msra.mxu1 %v1064_v6 }
 0x2c1   :  { %1066 = vmatprep.subr.bf16.mxu1 %v1104_v12 }
 0x2c4   :  { %1068 = vmatpush3.bf16.msra.mxu1 %v1067_v9 }
 0x2c5   :  { %1069 = vmatprep.subr.bf16.mxu1 %v1104_v12 }
 0x2c8   :  { %1071 = vmatpush3.bf16.msra.mxu1 %v1070_v14 }
 0x2c9   :  { %1072 = vmatprep.subr.bf16.mxu1 %v1104_v12  ;;  %v485_v12 = vld [vmem:[%s1636_s9 + $0x160] sm:$0xff] }
 0x2ca   :  { %v1073_v22 = vpack.c.bf16 %v488_v21, %v485_v12 }
 0x2cc   :  { %1074 = vmatpush3.bf16.msra.mxu1 %v1073_v22 }
 0x382   :  { %v436_v24 = vpop.f32.mrb[2].mxu1 }
 0x383   :  { %v437_v25 = vadd.f32 %v670_v23, %v436_v24  ;;  %v878_v26 = vpop.f32.mrb[3].mxu1 }
 0x385   :  { %v440_v27 = vmax.f32 %v437_v25, 0.0 }
 0x387   :  { %571 = vmatmul.mubr.f32.vlgmr.msra.gmra.mrb[4].mxu0 %v440_v27  ;;  %912 = vmatmul.mubr.f32.vlgmr.msra.gmra.mrb[4].mxu1 %v440_v27 }
 0x45a   :  { %v572_v37 = vpop.f32.mrb[4].mxu0  ;;  %v643_v38 = vpop.f32.mrb[4].mxu1 }
 0x45b   :  { %v573_v39 = vadd.f32 %v572_v37, %v494_v34  ;;  %v644_v40 = vadd.f32 %v643_v38, %v502_v35  ;;  %v574_v41 = vpop.f32.mrb[5].mxu0  ;;  %v913_v42 = vpop.f32.mrb[5].mxu1 }
 0x45c   :  { %v575_v43 = vadd.f32 %v574_v41, %v498_v36 }
 0x45d   :  { %647 = vst [vmem:[#allocation2] sm:$0xff] %v573_v39  ;;  %650 = vst.msk [vmem:[#allocation2 + $0x10] sm:$0xff] %vm649_vm5, %v644_v40 }
 0x45e   :  { %648 = vst [vmem:[#allocation2 + $0x8] sm:$0xff] %v575_v43 }
 0x45f   :  { %1091 = shalt.err (!%p1088_p4)
}
 0x460   :  { %s1092_s5 = scalar_lea.hbm %s1638_s11, 384 }
 0x461   :  { %p1093_p5 = scmp.ne.s32.totalorder %s1638_s11, %s1092_s5  ;;  %p1096_p6 = scmp.lt.u32.totalorder %s1092_s5, %s1638_s11 }
 0x463   :  { %p1098_p7 = pnand %p1096_p6, %p1093_p5 }
 0x465   :  { %1101 = shalt.err (!%p1098_p7)
}
 0x466   :  { %660 = dma.vmem_to_hbm [thread:$0]  %s658_s8, 384, %s1638_s11, [#allocation3]  }
 0x467   :  { %1102 = dma.done.wait [#allocation3], 384  }
 0x468   :  { %1103 = vsyncadd [#allocation3], 4294966912 }
 0x469   :  { %664 = vsyncpa [#allocation3], 1 }

</bundles_post_ra>
